<compile_context>
chip_gen: v5e
topology: v5e:2x2
jax: 0.10.0
libtpu: 0.0.40
codegen_flags: <defaults>
</compile_context>

<pallas_src>
import functools

import jax
import jax.numpy as jnp
from jax.experimental import pallas as pl
from jax.experimental.pallas import tpu as pltpu

_MAX_BLOCK_B = 4096          # max batch columns per grid step (multiple of 128)
_VMEM_BUDGET = 16 << 20      # double-buffered working-set budget (v7x 32 MiB scoped safe)


def _ema_linear_kernel(close_ref, prev_ref, w_ref, b_ref, out_ref, ema_ref, *, alpha):
    """Fused NaN-clean -> EMA update -> Linear(1,H) -> ReLU for one lane-dense batch tile.

    close_ref / prev_ref / ema_ref : (1, tb)   batch on the lane axis
    w_ref / b_ref                  : (H, 1)    weight / bias columns (grid-resident)
    out_ref                        : (H, tb)   transposed output slab (lane-dense)
    """
    close = close_ref[...]                                   # (1, tb) raw close prices
    close = jnp.where(jnp.isnan(close), 0.0, close)          # zero NaN close prices
    ema = close * alpha + prev_ref[...] * (1.0 - alpha)      # (1, tb) EMA update
    ema_ref[...] = ema                                       # new state (pre-cleanup, as in torch)
    ema_in = jnp.where(jnp.isnan(ema), 0.0, ema)
    out_t = ema_in * w_ref[...] + b_ref[...]                 # (1,tb)*(H,1)+(H,1) -> (H,tb) on VPU
    out_ref[...] = jnp.maximum(out_t, 0.0)                   # ReLU


def _pick_tb(B, H):
    """Largest lane-dense batch tile that fits the VMEM budget (f32, double-buffered)."""
    # bytes per batch column across all pipelined tiles: out (H,tb) + close/prev/ema (1,tb).
    per_col = 2 * 4 * (H + 3)
    fit = max(128, (_VMEM_BUDGET // per_col) // 128 * 128)
    # If tb < B it is a multiple of 128 (both caps are), satisfying the lane constraint;
    # otherwise tb == B is a full-extent block.
    return min(B, _MAX_BLOCK_B, fit)


def ema_layer_forward(x, prev_ema, weight, bias, alpha):
    """Forward pass. Returns (out (B,H), new_ema (B,)). prev_ema=None => first call."""
    if x.ndim != 2 or x.shape[1] != 4:
        raise ValueError("Input tensor must have 4 features: open, high, low, close")
    B = x.shape[0]
    H = weight.shape[0]

    x = jnp.asarray(x, jnp.float32)
    close_row = x[:, 3].reshape(1, B)                        # lane-dense close prices (NaNs cleaned in-kernel)
    w_col = jnp.asarray(weight, jnp.float32).reshape(H, 1)   # Linear(1,H) weight as a column
    b_col = jnp.asarray(bias, jnp.float32).reshape(H, 1)

    if prev_ema is None:
        prev_row = jnp.zeros((1, B), jnp.float32)
        alpha_eff = 1.0                                      # ema = close on first call
    else:
        prev_row = jnp.asarray(prev_ema, jnp.float32).reshape(1, B)
        alpha_eff = float(alpha)

    tb = _pick_tb(B, H)
    grid = (pl.cdiv(B, tb),)

    out_t, ema_row = pl.pallas_call(
        functools.partial(_ema_linear_kernel, alpha=alpha_eff),
        out_shape=(
            jax.ShapeDtypeStruct((H, B), jnp.float32),       # transposed output slab
            jax.ShapeDtypeStruct((1, B), jnp.float32),       # new EMA state
        ),
        grid_spec=pltpu.PrefetchScalarGridSpec(
            num_scalar_prefetch=0,
            grid=grid,
            in_specs=[
                pl.BlockSpec((1, tb), lambda i: (0, i)),     # close prices (lane-dense)
                pl.BlockSpec((1, tb), lambda i: (0, i)),     # previous EMA (lane-dense)
                pl.BlockSpec((H, 1), lambda i: (0, 0)),      # weight column (resident)
                pl.BlockSpec((H, 1), lambda i: (0, 0)),      # bias column (resident)
            ],
            out_specs=[
                pl.BlockSpec((H, tb), lambda i: (0, i)),     # relu(linear(ema)).T (lane-dense)
                pl.BlockSpec((1, tb), lambda i: (0, i)),     # new EMA state (lane-dense)
            ],
        ),
        compiler_params=pltpu.CompilerParams(
            dimension_semantics=("parallel",),
            vmem_limit_bytes=32 << 20),
    )(close_row, prev_row, w_col, b_col)

    # Layout plumbing back to the module's (B, H) convention; EMA state to (B,).
    return out_t.T, ema_row.reshape(B)


def ema_layer_forward_ref(x, prev_ema, weight, bias, alpha):
    """Pure-JAX reference matching the PyTorch forward (functional state)."""
    x = jnp.where(jnp.isnan(x), 0.0, x)
    close = x[:, 3]
    if prev_ema is None:
        ema = close
    else:
        ema = close * alpha + prev_ema * (1.0 - alpha)
    ema_in = ema[:, None]
    ema_in = jnp.where(jnp.isnan(ema_in), 0.0, ema_in)
    out = jax.nn.relu(ema_in @ weight.T + bias)
    return out, ema


if __name__ == "__main__":
    key = jax.random.PRNGKey(0)
    B, H = 8, 32                      # batch=8 price rows, hidden_dim=32
    window_size = 5
    alpha = 2.0 / (window_size + 1)

    k1, k2, k3, k4 = jax.random.split(key, 4)
    x1 = jax.random.normal(k1, (B, 4), dtype=jnp.float32)
    x1 = x1.at[0, 3].set(jnp.nan)     # NaN close price -> must be zeroed
    x1 = x1.at[2, 1].set(jnp.nan)     # NaN high price  -> ignored (never reaches output)
    x2 = jax.random.normal(k2, (B, 4), dtype=jnp.float32)

    weight = jax.random.normal(k3, (H, 1), dtype=jnp.float32) * 0.5  # nn.Linear(1, H)
    bias = jax.random.normal(k4, (H,), dtype=jnp.float32) * 0.1

    # First call: self.ema is None -> ema = close.
    out1, ema1 = ema_layer_forward(x1, None, weight, bias, alpha)
    # Second call: EMA update with the stored state.
    out2, ema2 = ema_layer_forward(x2, ema1, weight, bias, alpha)
    jax.block_until_ready((out1, ema1, out2, ema2))

    r_out1, r_ema1 = ema_layer_forward_ref(x1, None, weight, bias, alpha)
    r_out2, r_ema2 = ema_layer_forward_ref(x2, r_ema1, weight, bias, alpha)

    assert out1.shape == (B, H) and out2.shape == (B, H)
    assert ema1.shape == (B,) and ema2.shape == (B,)
    assert bool(jnp.all(out1 >= 0.0)) and bool(jnp.all(out2 >= 0.0))
    assert jnp.allclose(out1, r_out1, atol=1e-5, rtol=1e-5)
    assert jnp.allclose(ema1, r_ema1, atol=1e-5, rtol=1e-5)
    assert jnp.allclose(out2, r_out2, atol=1e-5, rtol=1e-5)
    assert jnp.allclose(ema2, r_ema2, atol=1e-5, rtol=1e-5)

    print("KERNEL_OK")
</pallas_src>

<mosaic_0001>
module attributes {stable_mosaic.version = 11 : i64} {
  func.func @_ema_linear_kernel(%arg0: i32, %arg1: memref<1x8xf32, #tpu.memory_space<vmem>>, %arg2: memref<1x8xf32, #tpu.memory_space<vmem>>, %arg3: memref<32x1xf32, #tpu.memory_space<vmem>>, %arg4: memref<32x1xf32, #tpu.memory_space<vmem>>, %arg5: memref<32x8xf32, #tpu.memory_space<vmem>>, %arg6: memref<1x8xf32, #tpu.memory_space<vmem>>) attributes {dimension_semantics = [#tpu.dimension_semantics<parallel>], iteration_bounds = array<i64: 1>, scalar_prefetch = 0 : i64, scratch_operands = 0 : i64, tpu.core_type = #tpu.core_type<tc>, window_params = [{transform_indices = @transform_0, window_bounds = array<i64: 1, 8>}, {transform_indices = @transform_1, window_bounds = array<i64: 1, 8>}, {pipeline_mode = #tpu.pipeline_mode<synchronous>, transform_indices = @transform_2, window_bounds = array<i64: 32, 1>}, {pipeline_mode = #tpu.pipeline_mode<synchronous>, transform_indices = @transform_3, window_bounds = array<i64: 32, 1>}, {transform_indices = @transform_4, window_bounds = array<i64: 32, 8>}, {transform_indices = @transform_5, window_bounds = array<i64: 1, 8>}]} {
    %c0 = arith.constant 0 : index
    %c0_0 = arith.constant 0 : index
    %0 = vector.load %arg1[%c0, %c0_0] : memref<1x8xf32, #tpu.memory_space<vmem>>, vector<1x8xf32>
    %1 = arith.cmpf one, %0, %0 : vector<1x8xf32>
    %cst = arith.constant 0.000000e+00 : f32
    %2 = vector.broadcast %cst : f32 to vector<1x8xf32>
    %3 = arith.select %1, %2, %0 : vector<1x8xi1>, vector<1x8xf32>
    %cst_1 = arith.constant 1.000000e+00 : f32
    %4 = vector.broadcast %cst_1 : f32 to vector<1x8xf32>
    %5 = arith.mulf %3, %4 : vector<1x8xf32>
    %c0_2 = arith.constant 0 : index
    %c0_3 = arith.constant 0 : index
    %6 = vector.load %arg2[%c0_2, %c0_3] : memref<1x8xf32, #tpu.memory_space<vmem>>, vector<1x8xf32>
    %cst_4 = arith.constant 0.000000e+00 : f32
    %7 = vector.broadcast %cst_4 : f32 to vector<1x8xf32>
    %8 = arith.mulf %6, %7 : vector<1x8xf32>
    %9 = arith.addf %5, %8 : vector<1x8xf32>
    %c0_5 = arith.constant 0 : index
    %c0_6 = arith.constant 0 : index
    %10 = vector.load %arg6[%c0_5, %c0_6] : memref<1x8xf32, #tpu.memory_space<vmem>>, vector<1x8xf32>
    tpu.vector_store %arg6[%c0_5, %c0_6], %9 {strides = array<i32>} : memref<1x8xf32, #tpu.memory_space<vmem>>, vector<1x8xf32>,
    %11 = arith.cmpf one, %9, %9 : vector<1x8xf32>
    %cst_7 = arith.constant 0.000000e+00 : f32
    %12 = vector.broadcast %cst_7 : f32 to vector<1x8xf32>
    %13 = arith.select %11, %12, %9 : vector<1x8xi1>, vector<1x8xf32>
    %c0_8 = arith.constant 0 : index
    %c0_9 = arith.constant 0 : index
    %14 = vector.load %arg3[%c0_8, %c0_9] : memref<32x1xf32, #tpu.memory_space<vmem>>, vector<32x1xf32>
    %15 = vector.broadcast %13 : vector<1x8xf32> to vector<32x8xf32>
    %16 = vector.broadcast %14 : vector<32x1xf32> to vector<32x8xf32>
    %17 = arith.mulf %15, %16 : vector<32x8xf32>
    %c0_10 = arith.constant 0 : index
    %c0_11 = arith.constant 0 : index
    %18 = vector.load %arg4[%c0_10, %c0_11] : memref<32x1xf32, #tpu.memory_space<vmem>>, vector<32x1xf32>
    %19 = vector.broadcast %18 : vector<32x1xf32> to vector<32x8xf32>
    %20 = arith.addf %17, %19 : vector<32x8xf32>
    %cst_12 = arith.constant 0.000000e+00 : f32
    %21 = vector.broadcast %cst_12 : f32 to vector<32x8xf32>
    %22 = arith.maximumf %20, %21 : vector<32x8xf32>
    %c0_13 = arith.constant 0 : index
    %c0_14 = arith.constant 0 : index
    %23 = vector.load %arg5[%c0_13, %c0_14] : memref<32x8xf32, #tpu.memory_space<vmem>>, vector<32x8xf32>
    tpu.vector_store %arg5[%c0_13, %c0_14], %22 {strides = array<i32>} : memref<32x8xf32, #tpu.memory_space<vmem>>, vector<32x8xf32>,
    return
  }
  func.func @transform_0(%arg0: i32) -> (i32, i32) {
    %c0_i32 = arith.constant 0 : i32
    %c0_i32_0 = arith.constant 0 : i32
    return %c0_i32, %arg0 : i32, i32
  }
  func.func @transform_1(%arg0: i32) -> (i32, i32) {
    %c0_i32 = arith.constant 0 : i32
    %c0_i32_0 = arith.constant 0 : i32
    return %c0_i32, %arg0 : i32, i32
  }
  func.func @transform_2(%arg0: i32) -> (i32, i32) {
    %c0_i32 = arith.constant 0 : i32
    %c0_i32_0 = arith.constant 0 : i32
    %c0_i32_1 = arith.constant 0 : i32
    return %c0_i32, %c0_i32_0 : i32, i32
  }
  func.func @transform_3(%arg0: i32) -> (i32, i32) {
    %c0_i32 = arith.constant 0 : i32
    %c0_i32_0 = arith.constant 0 : i32
    %c0_i32_1 = arith.constant 0 : i32
    return %c0_i32, %c0_i32_0 : i32, i32
  }
  func.func @transform_4(%arg0: i32) -> (i32, i32) {
    %c0_i32 = arith.constant 0 : i32
    %c0_i32_0 = arith.constant 0 : i32
    return %c0_i32, %arg0 : i32, i32
  }
  func.func @transform_5(%arg0: i32) -> (i32, i32) {
    %c0_i32 = arith.constant 0 : i32
    %c0_i32_0 = arith.constant 0 : i32
    return %c0_i32, %arg0 : i32, i32
  }
}

</mosaic_0001>

<bundles_post_ra>
// kernel: tpu_custom_call.1
= control target key start
LH: loop header
LB: loop body
LE: loop exit
PB: predicated region body
PF: predicated region fallthrough
CT: control target
= control target key end

     0   :  { %v149_v2 = vmov 0   ;;  %s230_s0 = inlined_call_operand.vmem [shape: f32[1,8], index: 0, kind: input, shape index: {}]   ;;  %s231_s1 = inlined_call_operand.vmem [shape: f32[1,8], index: 1, kind: input, shape index: {}]   ;;  %s232_s2 = inlined_call_operand.vmem [shape: f32[32,1], index: 2, kind: input, shape index: {}]   ;;  %s233_s3 = inlined_call_operand.vmem [shape: f32[32,1], index: 3, kind: input, shape index: {}]   ;;  %s234_s4 = inlined_call_operand.vmem [shape: f32[32,8], index: 4, kind: output, shape index: {0}]   ;;  %s235_s5 = inlined_call_operand.hbm [shape: f32[1,8], index: 5, kind: output, shape index: {1}]  }
   0x1   :  { %v32_v0 = vld [vmem:[%s232_s2 + $0x10] sm:$0xff]  ;;  %v30_v1 = vld [vmem:[%s232_s2] sm:$0xff]  ;;  %121 = vset.pattern.permute.xlu1 %v149_v2  ;;  %120 = vset.pattern.permute.xlu0 %v149_v2 }
   0x2   :  { %49 = vperm.xlu1 %121, %v32_v0   ;;  %39 = vperm.xlu0 %120, %v30_v1   ;;  %v61_v3 = vld [vmem:[%s233_s3] sm:$0xff] }
   0x3   :  { %11 = vsyncpa [#allocation3], 0  ;;  %122 = vset.pattern.permute.xlu2 %v149_v2  ;;  %v33_v4 = vld [vmem:[%s232_s2 + $0x18] sm:$0xff]  ;;  %v31_v5 = vld [vmem:[%s232_s2 + $0x8] sm:$0xff]  ;;  %s150_s12 = smov [#allocation2]   ;;  %s107_s16 = sshll.u32 %s235_s5, 4  ;;  %s108_s16 = int_to_ptr.hbm [resolvable:$true] %s107_s16 }
   0x4   :  { %67 = vperm.xlu2 %122, %v61_v3   ;;  %v62_v6 = vld [vmem:[%s233_s3 + $0x8] sm:$0xff]  ;;  %v64_v7 = vld [vmem:[%s233_s3 + $0x18] sm:$0xff]  ;;  %v63_v8 = vld [vmem:[%s233_s3 + $0x10] sm:$0xff]  ;;  %s105_s13 = sshll.u32 %s150_s12, 4  ;;  %vm26_vm1 = vcmask 57344   ;;  %vm93_vm3 = vcmask 64512   ;;  %s106_s13 = int_to_ptr.vmem [resolvable:$true] %s105_s13 }
   0x5   :  { %v20_v9 = vld [vmem:[%s230_s0] sm:$0x1] }
   0x6   :  { %v23_v10 = vld [vmem:[%s231_s1] sm:$0x1]  ;;  %vm21_vm0 = vcmp.ne.f32.partialorder %v20_v9, %v20_v9 }
   0x7   :  { %v24_v11 = vmul.f32 0.0, %v23_v10  ;;  %v22_v12 = vsel %vm21_vm0, 0.0, %v20_v9 }
   0x9   :  { %v25_v13 = vadd.f32 %v24_v11, %v22_v12 }
   0xa   :  { %54 = vperm.xlu1 %121, %v33_v4   ;;  %44 = vperm.xlu0 %120, %v31_v5  }
   0xb   :  { %27 = vst.msk [vmem:[#allocation2] sm:$0x1] %vm26_vm1, %v25_v13  ;;  %vm28_vm2 = vcmp.ne.f32.partialorder %v25_v13, %v25_v13 }
   0xc   :  { %72 = vperm.xlu2 %122, %v62_v6   ;;  %110 = dma.vmem_to_hbm [thread:$0]  %s106_s13, 16, %s108_s16, [#allocation3]   ;;  %v29_v14 = vsel %vm28_vm2, 0.0, %v25_v13 }
   0xd   :  { %v35_v15 = vperm.slane %v29_v14, 0 }
  0x12   :  { %82 = vperm.xlu1 %121, %v64_v7   ;;  %77 = vperm.xlu0 %120, %v63_v8  }
  0x5e   :  { %v68_v16 = vpop.permute.xlu2 %67 }
  0x66   :  { %v73_v25 = vpop.permute.xlu2 %72 }
  0x74   :  { %v50_v17 = vpop.permute.xlu1 %49  ;;  %v40_v18 = vpop.permute.xlu0 %39 }
  0x75   :  { %v57_v19 = vmul.f32 %v40_v18, %v35_v15  ;;  %v59_v28 = vmul.f32 %v50_v17, %v35_v15 }
  0x77   :  { %v85_v20 = vadd.f32 %v68_v16, %v57_v19 }
  0x79   :  { %v89_v21 = vmax.f32 %v85_v20, 0.0 }
  0x7b   :  { %94 = vst.msk [vmem:[%s234_s4] sm:$0xff] %vm93_vm3, %v89_v21 }
  0x7c   :  { %v55_v22 = vpop.permute.xlu1 %54  ;;  %v45_v23 = vpop.permute.xlu0 %44 }
  0x7d   :  { %v58_v24 = vmul.f32 %v45_v23, %v35_v15  ;;  %v60_v29 = vmul.f32 %v55_v22, %v35_v15 }
  0x7f   :  { %v86_v26 = vadd.f32 %v73_v25, %v58_v24 }
  0x81   :  { %v90_v27 = vmax.f32 %v86_v26, 0.0 }
  0x83   :  { %95 = vst.msk [vmem:[%s234_s4 + $0x8] sm:$0xff] %vm93_vm3, %v90_v27 }
  0x84   :  { %v83_v30 = vpop.permute.xlu1 %82  ;;  %v78_v31 = vpop.permute.xlu0 %77 }
  0x85   :  { %v88_v32 = vadd.f32 %v83_v30, %v60_v29  ;;  %v87_v33 = vadd.f32 %v78_v31, %v59_v28 }
  0x87   :  { %v92_v34 = vmax.f32 %v88_v32, 0.0  ;;  %v91_v35 = vmax.f32 %v87_v33, 0.0 }
  0x89   :  { %97 = vst.msk [vmem:[%s234_s4 + $0x18] sm:$0xff] %vm93_vm3, %v92_v34 }
  0x8a   :  { %96 = vst.msk [vmem:[%s234_s4 + $0x10] sm:$0xff] %vm93_vm3, %v91_v35 }
  0x8b   :  { %147 = dma.done.wait [#allocation3], 16  }
  0x8c   :  { %148 = vsyncadd [#allocation3], 4294967280 }
  0x8d   :  { %117 = vsyncpa [#allocation3], 1 }

</bundles_post_ra>
